<compile_context>
chip_gen: v5e
topology: v5e:2x2
jax: 0.10.0
libtpu: 0.0.40
codegen_flags: <defaults>
</compile_context>

<pallas_src>
import jax
import jax.numpy as jnp
from jax.experimental import pallas as pl
from jax.experimental.pallas import tpu as pltpu

LEAKY_SLOPE = 0.01  # nn.LeakyReLU default negative_slope
BN_EPS = 1e-5       # nn.BatchNorm2d default eps


def resnet_kernel(x_ref, gamma_ref, beta_ref, w_ref, bias_ref, o_ref):
    # x_ref:     (C, HW)  f32 VMEM  input, per-channel flatten of NCHW
    # gamma_ref: (C, 1)   f32 VMEM  BN weight
    # beta_ref:  (C, 1)   f32 VMEM  BN bias
    # w_ref:     (C, HW)  f32 VMEM  Linear weight in view(1,12) order
    # bias_ref:  (1,)     f32 SMEM  Linear bias (scalar)
    # o_ref:     (1, 1)   f32 VMEM  output
    x = x_ref[...]

    # --- BatchNorm2d (training-mode batch statistics, biased variance, per channel) ---
    mean = jnp.mean(x, axis=1, keepdims=True)                      # (C, 1)
    centered = x - mean
    var = jnp.mean(centered * centered, axis=1, keepdims=True)     # (C, 1)
    # Fold gamma into the rsqrt on the (C,1) vectors: one full-tile mul-add total.
    scale = gamma_ref[...] * jax.lax.rsqrt(var + BN_EPS)           # EUP rsqrt, (C, 1)
    y = centered * scale + beta_ref[...]                           # (C, HW)

    # --- LeakyReLU ---
    y = jnp.where(y > 0, y, LEAKY_SLOPE * y)

    # --- view(1, 12) + Linear(12, 1) ---
    # Keep this as elementwise multiply + reduce on the VPU/XLU.  Do NOT convert
    # to jnp.dot / pl.dot: a 12-element contraction would occupy a full padded
    # MXU pass (+ MRF/MRB drain), strictly slower than one vmul + reduce.
    s = jnp.sum(y * w_ref[...])                                    # rank-0

    # Scalar exit; masked single-lane (1,1) store accepted knowingly.
    o_ref[...] = jnp.full((1, 1), s + bias_ref[0], dtype=o_ref.dtype)


def resnet_forward(x_nchw, gamma, beta, w, b):
    """x_nchw: (1, C, H, W) with C*H*W == 12; gamma/beta: (C,); w: (1, 12); b: (1,) -> (1, 1)."""
    C = x_nchw.shape[1]
    HW = x_nchw.shape[2] * x_nchw.shape[3]
    n_elem = C * HW

    # (C, HW) layout; row-major flatten matches x.view(1, 12) NCHW order.
    # Only cheap reshapes/casts here -- no per-call broadcast/stack slab.
    x2d = x_nchw.reshape(C, HW).astype(jnp.float32)
    gamma2d = gamma.astype(jnp.float32).reshape(C, 1)
    beta2d = beta.astype(jnp.float32).reshape(C, 1)
    w2d = w.astype(jnp.float32).reshape(C, HW)       # Linear weight in view order
    b1 = b.astype(jnp.float32).reshape(1)            # 1-D SMEM scalar (no [8,128] padding)

    vmem = pl.BlockSpec(memory_space=pltpu.MemorySpace.VMEM)
    smem = pl.BlockSpec(memory_space=pltpu.MemorySpace.SMEM)

    return pl.pallas_call(
        resnet_kernel,
        out_shape=jax.ShapeDtypeStruct((1, 1), jnp.float32),
        in_specs=[vmem, vmem, vmem, vmem, smem],
        out_specs=vmem,
        cost_estimate=pl.CostEstimate(
            flops=8 * n_elem,                       # BN + leakyrelu + dot, order of magnitude
            transcendentals=C,                      # one rsqrt per channel
            bytes_accessed=4 * (2 * n_elem + 2 * C + 1 + 1),
        ),
    )(x2d, gamma2d, beta2d, w2d, b1)


def resnet_reference(x_nchw, gamma, beta, w, b):
    """Pure-JAX reference replicating the PyTorch forward (training-mode BN)."""
    x = x_nchw.astype(jnp.float32)
    mean = jnp.mean(x, axis=(0, 2, 3), keepdims=True)
    var = jnp.mean((x - mean) ** 2, axis=(0, 2, 3), keepdims=True)
    xhat = (x - mean) / jnp.sqrt(var + BN_EPS)
    y = xhat * gamma.reshape(1, -1, 1, 1) + beta.reshape(1, -1, 1, 1)
    y = jnp.where(y > 0, y, LEAKY_SLOPE * y)
    flat = y.reshape(1, 12)
    return flat @ w.T + b.reshape(1, -1)


if __name__ == "__main__":
    key = jax.random.PRNGKey(0)
    kx, kw, kb, kg, kbe = jax.random.split(key, 5)

    # Input consistent with forward(): 12 total elements, 4 channels -> (1, 4, 1, 3)
    featureSize, in_features, out_features = 4, 12, 1
    x = jax.random.normal(kx, (1, featureSize, 1, 3), dtype=jnp.float32)

    # BatchNorm affine params (non-default values to exercise the affine path).
    gamma = 1.0 + 0.1 * jax.random.normal(kg, (featureSize,), dtype=jnp.float32)
    beta = 0.1 * jax.random.normal(kbe, (featureSize,), dtype=jnp.float32)

    # Linear(12, 1) params, PyTorch-style uniform init.
    bound = 1.0 / jnp.sqrt(in_features)
    w = jax.random.uniform(kw, (out_features, in_features), jnp.float32, -bound, bound)
    b = jax.random.uniform(kb, (out_features,), jnp.float32, -bound, bound)

    out = resnet_forward(x, gamma, beta, w, b)
    out = jax.block_until_ready(out)

    ref = resnet_reference(x, gamma, beta, w, b)
    assert out.shape == (1, 1)
    assert jnp.allclose(out, ref, atol=1e-5, rtol=1e-5), (out, ref)

    print("KERNEL_OK")
</pallas_src>

<mosaic_0001>
module attributes {stable_mosaic.version = 11 : i64} {
  func.func @resnet_kernel(%arg0: memref<4x3xf32, #tpu.memory_space<vmem>>, %arg1: memref<4x1xf32, #tpu.memory_space<vmem>>, %arg2: memref<4x1xf32, #tpu.memory_space<vmem>>, %arg3: memref<4x3xf32, #tpu.memory_space<vmem>>, %arg4: memref<1xf32, #tpu.memory_space<smem>>, %arg5: memref<1x1xf32, #tpu.memory_space<vmem>>) attributes {dimension_semantics = [], scalar_prefetch = 0 : i64, scratch_operands = 0 : i64, tpu.core_type = #tpu.core_type<tc>} {
    %c0 = arith.constant 0 : index
    %c0_0 = arith.constant 0 : index
    %0 = vector.load %arg0[%c0, %c0_0] : memref<4x3xf32, #tpu.memory_space<vmem>>, vector<4x3xf32>
    %cst = arith.constant dense<0.000000e+00> : vector<4xf32>
    %1 = vector.multi_reduction <add>, %0, %cst [1] : vector<4x3xf32> to vector<4xf32>
    %2 = vector.shape_cast %1 : vector<4xf32> to vector<4x1xf32>
    %cst_1 = arith.constant 3.000000e+00 : f32
    %3 = vector.broadcast %cst_1 : f32 to vector<4x1xf32>
    %4 = arith.divf %2, %3 : vector<4x1xf32>
    %5 = vector.broadcast %4 : vector<4x1xf32> to vector<4x3xf32>
    %6 = arith.subf %0, %5 : vector<4x3xf32>
    %7 = arith.mulf %6, %6 : vector<4x3xf32>
    %cst_2 = arith.constant dense<0.000000e+00> : vector<4xf32>
    %8 = vector.multi_reduction <add>, %7, %cst_2 [1] : vector<4x3xf32> to vector<4xf32>
    %9 = vector.shape_cast %8 : vector<4xf32> to vector<4x1xf32>
    %cst_3 = arith.constant 3.000000e+00 : f32
    %10 = vector.broadcast %cst_3 : f32 to vector<4x1xf32>
    %11 = arith.divf %9, %10 : vector<4x1xf32>
    %c0_4 = arith.constant 0 : index
    %c0_5 = arith.constant 0 : index
    %12 = vector.load %arg1[%c0_4, %c0_5] : memref<4x1xf32, #tpu.memory_space<vmem>>, vector<4x1xf32>
    %cst_6 = arith.constant 9.99999974E-6 : f32
    %13 = vector.broadcast %cst_6 : f32 to vector<4x1xf32>
    %14 = arith.addf %11, %13 : vector<4x1xf32>
    %15 = math.rsqrt %14 : vector<4x1xf32>
    %16 = arith.mulf %12, %15 : vector<4x1xf32>
    %17 = vector.broadcast %16 : vector<4x1xf32> to vector<4x3xf32>
    %18 = arith.mulf %6, %17 : vector<4x3xf32>
    %c0_7 = arith.constant 0 : index
    %c0_8 = arith.constant 0 : index
    %19 = vector.load %arg2[%c0_7, %c0_8] : memref<4x1xf32, #tpu.memory_space<vmem>>, vector<4x1xf32>
    %20 = vector.broadcast %19 : vector<4x1xf32> to vector<4x3xf32>
    %21 = arith.addf %18, %20 : vector<4x3xf32>
    %cst_9 = arith.constant 0.000000e+00 : f32
    %22 = vector.broadcast %cst_9 : f32 to vector<4x3xf32>
    %23 = arith.cmpf ogt, %21, %22 : vector<4x3xf32>
    %cst_10 = arith.constant 0.00999999977 : f32
    %24 = vector.broadcast %cst_10 : f32 to vector<4x3xf32>
    %25 = arith.mulf %24, %21 : vector<4x3xf32>
    %26 = arith.select %23, %21, %25 : vector<4x3xi1>, vector<4x3xf32>
    %c0_11 = arith.constant 0 : index
    %c0_12 = arith.constant 0 : index
    %27 = vector.load %arg3[%c0_11, %c0_12] : memref<4x3xf32, #tpu.memory_space<vmem>>, vector<4x3xf32>
    %28 = arith.mulf %26, %27 : vector<4x3xf32>
    %29 = vector.shape_cast %28 : vector<4x3xf32> to vector<1x4x3xf32>
    %cst_13 = arith.constant dense<0.000000e+00> : vector<1xf32>
    %30 = vector.multi_reduction <add>, %29, %cst_13 [1, 2] : vector<1x4x3xf32> to vector<1xf32>
    %31 = vector.shape_cast %30 : vector<1xf32> to vector<1x1x1xf32>
    %32 = vector.extract %31[0, 0, 0] : f32 from vector<1x1x1xf32>
    %c0_14 = arith.constant 0 : index
    %33 = memref.load %arg4[%c0_14] : memref<1xf32, #tpu.memory_space<smem>>
    %34 = arith.addf %32, %33 : f32
    %35 = vector.broadcast %34 : f32 to vector<1x1xf32>
    %c0_15 = arith.constant 0 : index
    %c0_16 = arith.constant 0 : index
    %36 = vector.load %arg5[%c0_15, %c0_16] : memref<1x1xf32, #tpu.memory_space<vmem>>, vector<1x1xf32>
    tpu.vector_store %arg5[%c0_15, %c0_16], %35 {strides = array<i32>} : memref<1x1xf32, #tpu.memory_space<vmem>>, vector<1x1xf32>,
    return
  }
}

</mosaic_0001>

<bundles_post_ra>
// kernel: tpu_custom_call.1
= control target key start
LH: loop header
LB: loop body
LE: loop exit
PB: predicated region body
PF: predicated region fallthrough
CT: control target
= control target key end

     0   :  { %vm23_vm0 = vcmask 19456   ;;  %s194_s0 = inlined_call_operand.vmem [shape: f32[4,3], index: 0, kind: input, shape index: {}]   ;;  %s195_s1 = inlined_call_operand.vmem [shape: f32[4,1], index: 1, kind: input, shape index: {}]   ;;  %s196_s2 = inlined_call_operand.vmem [shape: f32[4,1], index: 2, kind: input, shape index: {}]   ;;  %s197_s3 = inlined_call_operand.vmem [shape: f32[4,3], index: 3, kind: input, shape index: {}]   ;;  %s198_s4 = inlined_call_operand.<no memory space> [shape: f32[1], index: 4, kind: input, shape index: {}]   ;;  %s199_s5 = inlined_call_operand.hbm [shape: f32[1,1], index: 5, kind: output, shape index: {}]  }
   0x1   :  { %v22_v0 = vld [vmem:[%s194_s0] sm:$0xf] }
   0x2   :  { %11 = vsyncpa [#allocation4], 0  ;;  %v24_v1 = vsel %vm23_vm0, %v22_v0, 0.0  ;;  %v140_v2 = vmov 3.0   ;;  %v141_v14 = vmov 0   ;;  %s94_s27 = sshll.u32 %s199_s5, 4  ;;  %s95_s27 = int_to_ptr.hbm [resolvable:$true] %s94_s27 }
   0x3   :  { %25 = vadd.xlane.f32.xlu0 %v24_v1  ;;  %110 = vrcp.f32 %v140_v2  ;;  %108 = vset.pattern.permute.xlu1 %v141_v14  ;;  %v41_v23 = vld [vmem:[%s195_s1] sm:$0xf]  ;;  %s142_s1 = smov [#allocation3]   ;;  %vm85_vm6 = vcmask 0  }
   0x4   :  { %109 = vset.pattern.permute.xlu0 %v141_v14  ;;  %v60_v27 = vld [vmem:[%s196_s2] sm:$0xf]  ;;  %s92_s2 = sshll.u32 %s142_s1, 4  ;;  %s93_s2 = int_to_ptr.vmem [resolvable:$true] %s92_s2 }
   0x5   :  { %v70_v33 = vld [vmem:[%s197_s3] sm:$0xf] }
   0x9   :  { %v111_v3 = vpop.eup %110 }
   0xa   :  { %v28_v4 = vmul.f32 3.0, %v111_v3  ;;  %vm32_vm1 = vweird.f32 %v111_v3 }
   0xc   :  { %v29_v5 = vsub.f32 1.0, %v28_v4 }
   0xe   :  { %v30_v6 = vmul.f32 %v111_v3, %v29_v5 }
  0x10   :  { %v31_v7 = vadd.f32 %v111_v3, %v30_v6 }
  0x12   :  { %v33_v8 = vsel %vm32_vm1, %v111_v3, %v31_v7 }
  0x76   :  { %v26_v9 = vpop.xlane.xlu0 %25 }
  0x77   :  { %v34_v10 = vmul.f32 %v33_v8, %v26_v9 }
  0x79   :  { %v35_v11 = vsub.f32 %v22_v0, %v34_v10 }
  0x7b   :  { %v36_v12 = vmul.f32 %v35_v11, %v35_v11 }
  0x7d   :  { %v37_v13 = vsel %vm23_vm0, %v36_v12, 0.0 }
  0x7e   :  { %38 = vadd.xlane.f32.xlu0 %v37_v13 }
  0xf1   :  { %v39_v15 = vpop.xlane.xlu0 %38 }
  0xf2   :  { %v40_v16 = vmul.f32 %v39_v15, %v33_v8 }
  0xf4   :  { %v42_v17 = vadd.f32 1e-05, %v40_v16 }
  0xf6   :  { %112 = vrsqrt.f32 %v42_v17  ;;  %vm49_vm3 = vweird.f32 %v42_v17 }
  0xfc   :  { %v113_v18 = vpop.eup %112 }
  0xfd   :  { %v44_v19 = vmul.f32 %v113_v18, %v42_v17  ;;  %vm50_vm2 = vweird.f32 %v113_v18 }
  0xfe   :  { %vm51_vm4 = vmor %vm49_vm3, %vm50_vm2 }
  0xff   :  { %v45_v20 = vmul.f32 %v113_v18, %v44_v19 }
 0x101   :  { %v46_v21 = vmul.f32 0.5, %v45_v20 }
 0x103   :  { %v47_v22 = vsub.f32 1.5, %v46_v21 }
 0x105   :  { %v48_v24 = vmul.f32 %v113_v18, %v47_v22 }
 0x107   :  { %v52_v25 = vsel %vm51_vm4, %v113_v18, %v48_v24 }
 0x108   :  { %v53_v26 = vmul.f32 %v52_v25, %v41_v23 }
 0x10a   :  { %56 = vperm.xlu1 %108, %v53_v26  }
 0x112   :  { %63 = vperm.xlu1 %108, %v60_v27  }
 0x17c   :  { %v57_v28 = vpop.permute.xlu1 %56 }
 0x17d   :  { %v59_v29 = vmul.f32 %v57_v28, %v35_v11 }
 0x184   :  { %v64_v30 = vpop.permute.xlu1 %63 }
 0x185   :  { %v66_v31 = vadd.f32 %v64_v30, %v59_v29 }
 0x187   :  { %v68_v32 = vmul.f32 0.01, %v66_v31  ;;  %vm67_vm5 = vcmp.gt.f32.partialorder %v66_v31, 0.0 }
 0x189   :  { %v69_v34 = vsel %vm67_vm5, %v66_v31, %v68_v32 }
 0x18a   :  { %v71_v35 = vmul.f32 %v70_v33, %v69_v34 }
 0x18c   :  { %v72_v36 = vsel %vm23_vm0, %v71_v35, 0.0 }
 0x18d   :  { %73 = vadd.xlane.f32.xlu2 %v72_v36 }
 0x200   :  { %v74_v37 = vpop.xlane.xlu2 %73 }
 0x201   :  { %v75_v38 = vrot.slane %v74_v37, 4 }
 0x203   :  { %v76_v39 = vadd.f32 %v75_v38, %v74_v37 }
 0x205   :  { %v77_v40 = vrot.slane %v76_v39, 2 }
 0x207   :  { %v78_v41 = vadd.f32 %v77_v40, %v76_v39 }
 0x209   :  { %v79_v42 = vrot.slane %v78_v41, 1 }
 0x20b   :  { %v80_v43 = vadd.f32 %v79_v42, %v78_v41 }
 0x20d   :  { %103 = vpush %v80_v43 }
 0x23e   :  { %s104_s3 = spop %103 }
 0x23f   :  { %s83_s30 = sadd.f32 %s104_s3, %s198_s4 }
 0x241   :  { %v84_v44 = vstv %s83_s30 }
 0x242   :  { %86 = vst.msk [vmem:[#allocation3] sm:$0x1] %vm85_vm6, %v84_v44 }
 0x243   :  { %97 = dma.vmem_to_hbm [thread:$0]  %s93_s2, 16, %s95_s27, [#allocation4]  }
 0x244   :  { %138 = dma.done.wait [#allocation4], 16  }
 0x245   :  { %139 = vsyncadd [#allocation4], 4294967280 }
 0x246   :  { %102 = vsyncpa [#allocation4], 1 }

</bundles_post_ra>
